<compile_context>
chip_gen: v6e
topology: v6e:2x2x1
jax: 0.10.0
libtpu: 0.0.40
codegen_flags: <defaults>
</compile_context>

<pallas_src>
import math

import jax
import jax.numpy as jnp
from jax.experimental import pallas as pl
from jax.experimental.pallas import tpu as pltpu


# ----------------------------- Pallas kernels -----------------------------

def _conv1x1_add_kernel(xb_ref, xs_ref, w_ref, o_ref):
    """out = x_big + W_blockdiag @ x_small on dense (R_big, T) blocks.

    xb_ref: (R_big,  T) VMEM  -- G images' worth of max-channel rows
    xs_ref: (R_small,T) VMEM  -- G images' worth of small-channel rows
    w_ref : (R_big, R_small) VMEM -- block-diagonal 1x1 conv weight
    o_ref : (R_big,  T) VMEM
    """
    acc = xb_ref[...].astype(jnp.float32)
    acc = acc + jnp.dot(w_ref[...].astype(jnp.float32),
                        xs_ref[...].astype(jnp.float32),
                        preferred_element_type=jnp.float32)
    o_ref[...] = acc.astype(o_ref.dtype)  # single dense store


def _add_kernel(a_ref, b_ref, o_ref):
    # Pure element-wise add on sublane/lane-dense (R, T) blocks, with dtype
    # promotion handled by casting to the (promoted) output dtype.
    o_ref[...] = a_ref[...].astype(o_ref.dtype) + b_ref[...].astype(o_ref.dtype)


# --------------------------- tiling / glue helpers --------------------------

_LANE = 128
_SUBLANE = 8
_MIN_GRID_TILES = 4           # enough points for v7x's 2 TCs + pipeline overlap
_VMEM_LIMIT = 32 * 1024 * 1024  # raises v5e's 16 MiB scoped default; safe on all


def _round_up(x, m):
    return -(-x // m) * m


def _block_bytes_target():
    # ~1 MiB/block is the ~85%-of-roofline regime on v5e/v6e; on v7x the HBM
    # drains ~2.5x faster so bigger blocks are needed to amortize the ~0.35us
    # fixed per-step overhead.
    try:
        kind = jax.devices()[0].device_kind.lower()
    except Exception:  # pragma: no cover - defensive; fall back to small tiles
        kind = ""
    return (3 << 20) if "v7" in kind else (1 << 20)


def _choose_hw_tile(hw, sublane_rows, itemsize, other_grid=1):
    """Lane (HW) tile: multiple of 128, sized to ~target bytes per block while
    accounting for 8-sublane padding of the row axis, and shrunk (best effort)
    so the total grid has >= _MIN_GRID_TILES points."""
    if hw <= _LANE:
        return hw                               # full-extent block (always legal)
    rows_pad = _round_up(max(int(sublane_rows), 1), _SUBLANE)
    t = _block_bytes_target() // (itemsize * rows_pad)
    t = max(_LANE, (t // _LANE) * _LANE)
    min_hw_tiles = -(-_MIN_GRID_TILES // max(int(other_grid), 1))
    if min_hw_tiles > 1:
        cap = _round_up(-(-hw // min_hw_tiles), _LANE)
        t = max(_LANE, min(t, cap))
    if t >= hw:
        return hw                               # single full-extent block
    return t                                    # edge tile handled by block padding


def _align_sizes_pad(inputs, mode="replicate"):
    """Pad to (max H, max W); matches torch F.pad order: H first (top=floor,
    bottom=ceil), then W (left=floor, right=ceil)."""
    # TODO(synk): torch falls back to nearest-interpolation when 'reflect'
    # padding would exceed (size-1); only the pad modes are implemented, and
    # the pad itself is jnp glue (not fused into the Pallas kernel).
    jmode = {"constant": "constant", "replicate": "edge", "reflect": "reflect"}[mode]
    h_max = max(x.shape[2] for x in inputs)
    w_max = max(x.shape[3] for x in inputs)
    out = []
    for x in inputs:
        h_diff = max(h_max - x.shape[2], 0)
        w_diff = max(w_max - x.shape[3], 0)
        if h_diff > 0:
            x = jnp.pad(x, ((0, 0), (0, 0),
                            (h_diff // 2, h_diff - h_diff // 2), (0, 0)), mode=jmode)
        if w_diff > 0:
            x = jnp.pad(x, ((0, 0), (0, 0), (0, 0),
                            (w_diff // 2, w_diff - w_diff // 2)), mode=jmode)
        out.append(x)
    return out


# ------------------------------ pallas wrappers ------------------------------

def _call_conv1x1_add(x_big, x_small, w_oc_ic):
    """x_big: (N, Cout, H, W), x_small: (N, Cin, H, W), w: (Cout, Cin)."""
    n, cout, h, w = x_big.shape
    cin = x_small.shape[1]
    hw = h * w
    out_dtype = jnp.result_type(x_big.dtype, x_small.dtype, w_oc_ic.dtype)
    itemsize = jnp.dtype(out_dtype).itemsize

    # Fold G batch images into the sublane axis so both row-block heights are
    # multiples of 8 (dense vregs / unmasked stores); fall back to the full
    # batch as one row block (always a legal full-extent block) when G >= N.
    g_big = _SUBLANE // math.gcd(cout, _SUBLANE)
    g_small = _SUBLANE // math.gcd(cin, _SUBLANE)
    g = (g_big * g_small) // math.gcd(g_big, g_small)   # lcm, <= 8
    if g >= n:
        g = n
    rb_big, rb_small = g * cout, g * cin
    # Block-diagonal weight: one jnp.dot handles all G images of a row block;
    # garbage rows of a partial last group only feed garbage output rows,
    # which are discarded on writeback.
    w_bd = w_oc_ic if g == 1 else jnp.kron(jnp.eye(g, dtype=w_oc_ic.dtype), w_oc_ic)

    xb = x_big.reshape(n * cout, hw)     # free views: no transpose, no HBM pass
    xs = x_small.reshape(n * cin, hw)

    n_groups = pl.cdiv(n, g)
    t_hw = _choose_hw_tile(hw, rb_big, itemsize, other_grid=n_groups)

    out = pl.pallas_call(
        _conv1x1_add_kernel,
        out_shape=jax.ShapeDtypeStruct((n * cout, hw), out_dtype),
        grid_spec=pltpu.PrefetchScalarGridSpec(
            num_scalar_prefetch=0,
            grid=(n_groups, pl.cdiv(hw, t_hw)),
            in_specs=[
                pl.BlockSpec((rb_big, t_hw), lambda gi, ti: (gi, ti)),
                pl.BlockSpec((rb_small, t_hw), lambda gi, ti: (gi, ti)),
                pl.BlockSpec((rb_big, rb_small), lambda gi, ti: (0, 0)),
            ],
            out_specs=pl.BlockSpec((rb_big, t_hw), lambda gi, ti: (gi, ti)),
        ),
        compiler_params=pltpu.CompilerParams(
            dimension_semantics=("parallel", "parallel"),
            vmem_limit_bytes=_VMEM_LIMIT),
    )(xb, xs, w_bd)
    return out.reshape(n, cout, h, w)


def _call_add(a, b):
    n, c, h, w = a.shape
    r, hw = n * c, h * w
    out_dtype = jnp.result_type(a.dtype, b.dtype)
    itemsize = jnp.dtype(out_dtype).itemsize

    # Sublane-dense row blocks over the flattened (N*C, H*W) view.
    r_blk = r if r <= 256 else 256                 # full-extent or multiple of 8
    n_row_tiles = pl.cdiv(r, r_blk)
    t_hw = _choose_hw_tile(hw, r_blk, itemsize, other_grid=n_row_tiles)

    out = pl.pallas_call(
        _add_kernel,
        out_shape=jax.ShapeDtypeStruct((r, hw), out_dtype),
        grid_spec=pltpu.PrefetchScalarGridSpec(
            num_scalar_prefetch=0,
            grid=(n_row_tiles, pl.cdiv(hw, t_hw)),
            in_specs=[
                pl.BlockSpec((r_blk, t_hw), lambda ri, ti: (ri, ti)),
                pl.BlockSpec((r_blk, t_hw), lambda ri, ti: (ri, ti)),
            ],
            out_specs=pl.BlockSpec((r_blk, t_hw), lambda ri, ti: (ri, ti)),
        ),
        compiler_params=pltpu.CompilerParams(
            dimension_semantics=("parallel", "parallel"),
            vmem_limit_bytes=_VMEM_LIMIT),
    )(a.reshape(r, hw), b.reshape(r, hw))
    return out.reshape(n, c, h, w)


# ------------------------------ module wrapper ------------------------------

def addition_forward(inputs, conv_weights, pad_mode="replicate"):
    """
    Equivalent of Addition.forward for a list of two NCHW inputs.
    conv_weights: dict {input_index: (Cout, Cin) 1x1 conv weight} for every
    input whose channel count is below max(C_i) (as built by ChannelAlignment).
    """
    assert len(inputs) == 2, "Addition kernel implemented for the 2-input case"
    assert len(conv_weights) <= 1, "at most one input can need channel alignment"
    inputs = _align_sizes_pad(list(inputs), mode=pad_mode)
    if len(conv_weights) == 0:
        return _call_add(inputs[0], inputs[1])
    i_small = list(conv_weights.keys())[0]
    i_big = 1 - i_small
    return _call_conv1x1_add(inputs[i_big], inputs[i_small], conv_weights[i_small])


def _reference(inputs, conv_weights, pad_mode="replicate"):
    xs = _align_sizes_pad(list(inputs), mode=pad_mode)
    aligned = []
    for i, x in enumerate(xs):
        if i in conv_weights:
            x = jnp.einsum("oc,nchw->nohw", conv_weights[i], x)
        aligned.append(x)
    return aligned[0] + aligned[1]


# ----------------------------------- main -----------------------------------

if __name__ == "__main__":
    key = jax.random.PRNGKey(0)
    k1, k2, k3, k4, k5 = jax.random.split(key, 5)

    # Two inputs with mismatched channels AND spatial dims (N, C_i, H_i, W_i).
    x0 = jax.random.normal(k1, (2, 4, 16, 16), dtype=jnp.float32)  # max channels / size
    x1 = jax.random.normal(k2, (2, 2, 12, 14), dtype=jnp.float32)  # needs pad + 1x1 conv

    # ChannelAlignment parameter: Conv2d(2 -> 4, kernel (1,1), bias=False).
    c_in, c_out = 2, 4
    bound = 1.0 / math.sqrt(c_in)
    w_1x1 = jax.random.uniform(k3, (c_out, c_in), dtype=jnp.float32,
                               minval=-bound, maxval=bound)
    conv_weights = {1: w_1x1}  # input index 1 has fewer channels

    # Path 1: pad + 1x1-conv + add (fused kernel).
    out = jax.block_until_ready(addition_forward([x0, x1], conv_weights))
    ref = _reference([x0, x1], conv_weights)
    assert out.shape == (2, 4, 16, 16), out.shape
    assert jnp.allclose(out, ref, atol=1e-5, rtol=1e-5), "conv+add mismatch vs reference"

    # Path 2: odd batch (exercises the batch-group folding / full-extent rows).
    x0b = jax.random.normal(k4, (3, 4, 16, 16), dtype=jnp.float32)
    x1b = jax.random.normal(k5, (3, 2, 16, 16), dtype=jnp.float32)
    out_b = jax.block_until_ready(addition_forward([x0b, x1b], conv_weights))
    ref_b = _reference([x0b, x1b], conv_weights)
    assert out_b.shape == (3, 4, 16, 16), out_b.shape
    assert jnp.allclose(out_b, ref_b, atol=1e-5, rtol=1e-5), "odd-batch conv+add mismatch"

    # Path 3: equal channels -> plain fused add kernel.
    x2 = jax.random.normal(jax.random.PRNGKey(7), (2, 4, 16, 16), dtype=jnp.float32)
    out2 = jax.block_until_ready(addition_forward([x0, x2], {}))
    ref2 = _reference([x0, x2], {})
    assert out2.shape == (2, 4, 16, 16), out2.shape
    assert jnp.allclose(out2, ref2, atol=1e-5, rtol=1e-5), "add mismatch vs reference"

    # Path 4: mixed dtypes -> promoted (f32) output, matches jnp promotion.
    x3 = x2.astype(jnp.bfloat16)
    out3 = jax.block_until_ready(addition_forward([x0, x3], {}))
    ref3 = _reference([x0, x3], {})
    assert out3.dtype == jnp.float32, out3.dtype
    assert jnp.allclose(out3, ref3, atol=1e-5, rtol=1e-5), "mixed-dtype add mismatch"

    print("KERNEL_OK")
</pallas_src>

<mosaic_0001>
module attributes {stable_mosaic.version = 11 : i64} {
  func.func @_conv1x1_add_kernel(%arg0: i32, %arg1: i32, %arg2: memref<8x128xf32, #tpu.memory_space<vmem>>, %arg3: memref<4x128xf32, #tpu.memory_space<vmem>>, %arg4: memref<8x4xf32, #tpu.memory_space<vmem>>, %arg5: memref<8x128xf32, #tpu.memory_space<vmem>>) attributes {dimension_semantics = [#tpu.dimension_semantics<parallel>, #tpu.dimension_semantics<parallel>], iteration_bounds = array<i64: 1, 2>, scalar_prefetch = 0 : i64, scratch_operands = 0 : i64, tpu.core_type = #tpu.core_type<tc>, window_params = [{transform_indices = @transform_0, window_bounds = array<i64: 8, 128>}, {transform_indices = @transform_1, window_bounds = array<i64: 4, 128>}, {pipeline_mode = #tpu.pipeline_mode<synchronous>, transform_indices = @transform_2, window_bounds = array<i64: 8, 4>}, {transform_indices = @transform_3, window_bounds = array<i64: 8, 128>}]} {
    %c0 = arith.constant 0 : index
    %c0_0 = arith.constant 0 : index
    %0 = vector.load %arg2[%c0, %c0_0] : memref<8x128xf32, #tpu.memory_space<vmem>>, vector<8x128xf32>
    %c0_1 = arith.constant 0 : index
    %c0_2 = arith.constant 0 : index
    %1 = vector.load %arg4[%c0_1, %c0_2] : memref<8x4xf32, #tpu.memory_space<vmem>>, vector<8x4xf32>
    %c0_3 = arith.constant 0 : index
    %c0_4 = arith.constant 0 : index
    %2 = vector.load %arg3[%c0_3, %c0_4] : memref<4x128xf32, #tpu.memory_space<vmem>>, vector<4x128xf32>
    %cst = arith.constant dense<0.000000e+00> : vector<8x128xf32>
    %3 = tpu.matmul %1, %2, %cst {dimension_numbers = #tpu.dot_dimension_numbers<[1], [0], [0], [1], [0, 0, 1, 1], [], []>} : vector<8x4xf32>, vector<4x128xf32>, vector<8x128xf32> -> vector<8x128xf32>
    %4 = arith.addf %0, %3 : vector<8x128xf32>
    %c0_5 = arith.constant 0 : index
    %c0_6 = arith.constant 0 : index
    %5 = vector.load %arg5[%c0_5, %c0_6] : memref<8x128xf32, #tpu.memory_space<vmem>>, vector<8x128xf32>
    tpu.vector_store %arg5[%c0_5, %c0_6], %4 {strides = array<i32>} : memref<8x128xf32, #tpu.memory_space<vmem>>, vector<8x128xf32>,
    return
  }
  func.func @transform_0(%arg0: i32, %arg1: i32) -> (i32, i32) {
    %c0_i32 = arith.constant 0 : i32
    return %arg0, %arg1 : i32, i32
  }
  func.func @transform_1(%arg0: i32, %arg1: i32) -> (i32, i32) {
    %c0_i32 = arith.constant 0 : i32
    return %arg0, %arg1 : i32, i32
  }
  func.func @transform_2(%arg0: i32, %arg1: i32) -> (i32, i32) {
    %c0_i32 = arith.constant 0 : i32
    %c0_i32_0 = arith.constant 0 : i32
    %c0_i32_1 = arith.constant 0 : i32
    return %c0_i32, %c0_i32_0 : i32, i32
  }
  func.func @transform_3(%arg0: i32, %arg1: i32) -> (i32, i32) {
    %c0_i32 = arith.constant 0 : i32
    return %arg0, %arg1 : i32, i32
  }
}

</mosaic_0001>

<bundles_post_ra>
// kernel: tpu_custom_call.1
= control target key start
LH: loop header
LB: loop body
LE: loop exit
PB: predicated region body
PF: predicated region fallthrough
CT: control target
= control target key end

     0   :  { %8 = vsyncpa [#allocation3], 0  ;;  %s803_s0 = inlined_call_operand.hbm [shape: f32[8,256], index: 0, kind: input, shape index: {}]   ;;  %s804_s1 = inlined_call_operand.vmem [shape: f32[4,256], index: 1, kind: input, shape index: {}]   ;;  %s805_s2 = inlined_call_operand.vmem [shape: f32[8,4], index: 2, kind: input, shape index: {}]   ;;  %s806_s3 = inlined_call_operand.hbm [shape: f32[8,256], index: 3, kind: output, shape index: {}]  }
   0x1   :  { %10 = vsyncpa [#allocation3 + $0x1], 0 }
   0x2   :  { %11 = vsyncpa [#allocation4], 0 }
   0x3   :  { %13 = vsyncpa [#allocation4 + $0x1], 0  ;;  %s655_s12 = smov 0   ;;  %s657_s13 = smov 0  }
   0x4   :  { %s659_s14 = smov 0   ;;  %s661_s15 = smov 0  }
   0x5   :  { %s663_s16 = smov 0   ;;  %s665_s17 = smov 0  }
   0x6 LB: > { %s434_s18 = sadd.s32 4294967295, %s629_s17   ;;  %s435_s19 = sadd.s32 4294967294, %s629_s17   ;;  %s629_s17 = sphi %s665_s17, %s19_s17   ;;  %s625_s16 = sphi %s663_s16, %s818_s16   ;;  %s621_s15 = sphi %s661_s15, %s817_s15   ;;  %s617_s14 = sphi %s659_s14, %s816_s14   ;;  %s613_s13 = sphi %s657_s13, %s815_s13   ;;  %s609_s12 = sphi %s655_s12, %s814_s12  }
   0x7   : > { %s28_s20 = sadd.s32 1, %s625_s16  ;;  %s40_s21 = sadd.s32 1, %s617_s14 }
   0x8   : > { %p29_p0 = scmp.ge.s32.totalorder %s28_s20, 2  ;;  %p47_p1 = scmp.ne.s32.totalorder %s617_s14, %s613_s13 }
   0x9   : > { %p48_p2 = scmp.eq.s32.totalorder %s629_s17, 0  ;;  %p53_p3 = scmp.ne.s32.totalorder %s613_s13, %s609_s12 }
   0xa   : > { %s820_s20 = smov (%p29_p0, %s28_s20), 0  ;;  %p54_p5 = scmp.eq.s32.totalorder %s434_s18, 0 }
   0xb   : > { %p696_p4 = por %p48_p2, %p47_p1  ;;  %s36_s23 = ssub.s32 %s625_s16, %s820_s20 }
   0xc   : > { %p128_p6 = scmp.eq.s32.totalorder %s434_s18, 1  ;;  %p38_p7 = scmp.eq.s32.totalorder %s36_s23, 0 }
   0xd   : > { %p702_p8 = por %p54_p5, %p53_p3  ;;  %p134_p10 = scmp.eq.s32.totalorder %s435_s19, 1 }
   0xe   : > { %p706_p9 = por %p128_p6, %p47_p1  ;;  %p469_p13 = scmp.lt.s32.totalorder %s629_s17, 2 }
   0xf   : > { %s711_s26 = scalar_select %p38_p7, %s617_s14, %s40_s21  }
  0x10   : > { %p713_p11 = por %p134_p10, %p53_p3  ;;  %s157_s28 = sand.u32 1, %s617_s14  }
  0x11   : > { %s438_s29 = sshll.u32 %s157_s28, 3  ;;  %s439_s30 = sshll.u32 %s625_s16, 7 }
  0x12   : > { %s810_s27 = scalar_select %p713_p11, 1, 0 }
  0x13   : > { %s168_s6 = scalar_lea.hbm %s803_s0, %s439_s30  ;;  %s161_s7 = scalar_lea.vmem [#allocation2], %s438_s29 }
  0x14   : > { %s170_s8 = sshll.u32 %s161_s7, 4  ;;  %p726_p0 = pnand %p469_p13, %p696_p4  ;;  %s171_s8 = int_to_ptr.vmem [resolvable:$true] %s170_s8 }
  0x15   : > { %p440_p1 = scmp.ge.s32.totalorder %s629_s17, 1  ;;  %p186_p2 = scmp.lt.s32.totalorder %s629_s17, 3 }
  0x16   : > { %s158_s10 = scalar_lea.sflag [#allocation3], %s157_s28  ;;  %p523_p3 = pneg %p726_p0 }
  0x17   : > { %s534_s11 = scalar_lea.vmem %s171_s8, 128  ;;  %s631_s18 = smov [#allocation2]  }
  0x18   : > { %p535_p5 = scmp.ne.s32.totalorder %s171_s8, %s534_s11  ;;  %s539_s19 = sshll.u32 %s631_s18, 4  ;;  %s540_s19 = int_to_ptr.vmem [resolvable:$false] %s539_s19 }
  0x19   : > { %s541_s21 = scalar_lea.vmem %s540_s19, 256  ;;  %p542_p10 = scmp.lt.s32.totalorder %s171_s8, %s540_s19 }
  0x1a   : > { %p537_p6 = pnand %p535_p5, %p523_p3  ;;  %p543_p12 = scmp.lt.s32.totalorder %s541_s21, %s534_s11 }
  0x1c   : > { %p538_p7 = pneg %p537_p6  ;;  %p544_p4 = por %p543_p12, %p542_p10 }
  0x1e   : > { %p545_p13 = pnand %p544_p4, %p538_p7 }
  0x20   : > { %548 = shalt.err (!%p545_p13)
}
  0x21   : > { %464 = dma.hbm_to_vmem [thread:$0]  (!%p726_p0), %s168_s6, 128, %s171_s8, %s158_s10  }
  0x22   : > { %p187_p11 = pnand %p440_p1, %p186_p2 }
  0x23   : > { %s741_s22 = sand.u32 (!%p187_p11), 1, %s613_s13  }
  0x24   : > { %190 = sbr.rel (%p187_p11) target bundleno = 258 (0x102), region = 32  ;;  %s441_s23 = sshll.u32 (!%p187_p11), %s741_s22, 3 }
  0x25   : > { %s193_s28 = scalar_lea.sflag (!%p187_p11), [#allocation3], %s741_s22  ;;  %s196_s29 = scalar_lea.vmem (!%p187_p11), [#allocation2], %s441_s23 }
  0x29   : > { %600 = dma.done.wait (%p702_p8), %s193_s28, 128  }
  0x2a   : > { %602 = vsyncadd (%p702_p8), %s193_s28, 4294967168  ;;  %p229_p12 = scmp.lt.s32.totalorder %s621_s15, 1  ;;  %v632_v0 = vmov 0.0   ;;  %vm633_vm0 = vmmov 0   ;;  %vm242_vm1 = vcmask 1043456   ;;  %vm238_vm2 = vcmask 31744  }
  0x2b   : > { %452 = vmatprep.subr.mxu0 %v632_v0  ;;  %454 = vmatprep.mubr.msk.f32.mxu0 %vm633_vm0, %v632_v0  ;;  %v236_v2 = vld [vmem:[%s805_s2] sm:$0xff]  ;;  %s447_s9 = sshll.u32 %s621_s15, 7  ;;  %s226_s10 = scalar_lea.vmem [#allocation5], %s441_s23 }
  0x2c   : > { %s230_s30 = scalar_select %p229_p12, %s621_s15, 1  ;;  %v235_v3 = vld [vmem:[%s196_s29] sm:$0xff] }
  0x2d   : > { %s334_s11 = sshll.u32 %s226_s10, 4  ;;  %s761_s21 = scalar_lea.hbm %s806_s3, %s447_s9  ;;  %s335_s11 = int_to_ptr.vmem [resolvable:$true] %s334_s11 }
  0x2e   : > { %s443_s4 = sshll.u32 %s230_s30, 2  ;;  %s319_s28 = scalar_lea.sflag [#allocation4], %s741_s22 }
  0x2f   : > { %s234_s7 = scalar_lea.vmem %s804_s1, %s443_s4  ;;  %s549_s30 = scalar_lea.vmem %s335_s11, 128 }
  0x30   : > { %v237_v1 = vld [vmem:[%s234_s7] sm:$0xf]  ;;  %p550_p8 = scmp.ne.s32.totalorder %s335_s11, %s549_s30  ;;  %s634_s29 = smov [#allocation5]  }
  0x31   : > { %453 = vmatpush3.msk.msra.mxu0 %vm242_vm1, %v237_v1  ;;  %s553_s15 = sshll.u32 %s634_s29, 4  ;;  %s554_s15 = int_to_ptr.vmem [resolvable:$false] %s553_s15 }
  0x32   : > { %455 = vmatmul.mubr.msk.f32.vlgmr.msra.gmra.mxu0 %vm238_vm2, %v236_v2  ;;  %p551_p11 = pnand %p550_p8, %p706_p9  ;;  %s555_s23 = scalar_lea.vmem %s554_s15, 256 }
  0x33   : > { %p556_p1 = scmp.lt.s32.totalorder %s335_s11, %s554_s15  ;;  %p557_p2 = scmp.lt.s32.totalorder %s555_s23, %s549_s30 }
  0x34   : > { %p552_p0 = pneg %p551_p11 }
  0x35   : > { %p558_p3 = por %p557_p2, %p556_p1 }
  0x37   : > { %p559_p5 = pnand %p558_p3, %p552_p0 }
  0xf2   : > { %v312_v4 = vpop.f32.mrf.mxu0 }
  0xf3   : > { %v316_v5 = vadd.f32 %v312_v4, %v235_v3 }
  0xf4   : > { %v456_v6 = vpop.f32.mrf.mxu0 }
  0xf5   : > { %317 = vst [vmem:[%s226_s10] sm:$0xff] %v316_v5 }
  0xf6   : > { %562 = shalt.err (!%p559_p5)
}
  0xf7   : > { %s563_s4 = scalar_lea.hbm %s761_s21, 128  ;;  %s567_s6 = scalar_lea.hbm %s806_s3, 256 }
  0xf8   : > { %p564_p6 = scmp.ne.s32.totalorder %s761_s21, %s563_s4  ;;  %p568_p4 = scmp.lt.s32.totalorder %s761_s21, %s806_s3 }
  0xf9   : > { %p569_p13 = scmp.lt.s32.totalorder %s567_s6, %s563_s4 }
  0xfa   : > { %p565_p7 = pnand %p564_p6, %p706_p9 }
  0xfb   : > { %p570_p12 = por %p569_p13, %p568_p4 }
  0xfc   : > { %p566_p10 = pneg %p565_p7 }
  0xfe   : > { %p571_p8 = pnand %p570_p12, %p566_p10 }
 0x100   : > { %574 = shalt.err (!%p571_p8)
}
 0x101   : > { %459 = dma.vmem_to_hbm [thread:$0]  (%p706_p9), %s335_s11, 128, %s761_s21, %s319_s28  }
 0x102 PF: > { %s346_s8 = sand.u32 1, %s609_s12   ;;  %p812_p11 = scmp.ne.s32.totalorder %s810_s27, 0 }
 0x103   : > { %p813_p0 = scmp.ge.s32.totalorder %s629_s17, 2  ;;  %s347_s9 = scalar_lea.sflag [#allocation4], %s346_s8 }
 0x105   : > { %p466_p1 = pnand %p813_p0, %p812_p11 }
 0x107   : > { %p467_p2 = pneg %p466_p1 }
 0x109   : > { %604 = dma.done.wait (%p467_p2), %s347_s9, 128  }
 0x10a   : > { %606 = vsyncadd (%p467_p2), %s347_s9, 4294967168  ;;  %s19_s17 = sadd.s32 1, %s629_s17   ;;  %s814_s12 = smov %s613_s13 }
 0x10b   : > { %p16_p3 = scmp.ge.s32.totalorder %s19_s17, 4   ;;  %s815_s13 = smov %s617_s14 }
 0x10c   : > { %s816_s14 = smov %s711_s26  ;;  %s817_s15 = smov %s625_s16 }
 0x10d   : > { %s818_s16 = smov %s820_s20  ;;  %18 = sbr.rel (!%p16_p3) target bundleno = 6 (0x6), region = 80 }
 0x112   :  { %352 = vsyncpa [#allocation3], 1 }
 0x113   :  { %354 = vsyncpa [#allocation3 + $0x1], 1 }
 0x114   :  { %355 = vsyncpa [#allocation4], 1 }
 0x115   :  { %357 = vsyncpa [#allocation4 + $0x1], 1 }

</bundles_post_ra>
